<compile_context>
chip_gen: v5e
topology: v5e:2x2
jax: 0.10.0
libtpu: 0.0.40
codegen_flags: <defaults>
</compile_context>

<pallas_src>
import jax
import jax.numpy as jnp
import numpy as np
from jax.experimental import pallas as pl
from jax.experimental.pallas import tpu as pltpu


_LANE = 128
_BLOCK_CAP_BYTES = 2 << 20   # ~2 MiB / block: (in+out) x double-buffer = 8 MiB,
                             # safe under v5e's 16 MiB scoped-VMEM default and on
                             # the measured 85-86% HBM-roofline tile-size plateau.
_SMALL_BYTES = 2 << 20       # <= this: single full-array block, zero reshapes.


def _ilayer_kernel(w_ref, x_ref, o_ref):
    # w_ref: (1,)-shaped scalar parameter in SMEM; x_ref / o_ref: VMEM tiles.
    o_ref[...] = (x_ref[...] * w_ref[0]).astype(o_ref.dtype)


def _round_up(n, m):
    return -(-n // m) * m


def _sublane(itemsize):
    # Native sublane granularity: 8 for 32-bit, 16 for bf16, 32 for int8/fp8
    # (sub-32-bit dtypes pack rows along sublanes).
    return 8 * max(1, 4 // itemsize)


def _as_2d(x):
    """Collapse x into a 2-D slab with NO element padding.

    Ragged tiles are handled by the cdiv grid + Pallas block masking, not by
    host-side concat/slice (which would re-read/re-write the whole tensor)."""
    total = x.size
    if x.ndim >= 2 and x.shape[-1] % _LANE == 0:
        return x.reshape(-1, x.shape[-1])        # keep the lane-dense last dim
    if total % _LANE == 0:
        for c in (1024, 512, 256, 128):
            if total % c == 0:
                return x.reshape(total // c, c)  # lane-dense factorization
    if x.ndim >= 2:
        return x.reshape(-1, x.shape[-1])        # full-extent last dim (maybe <128)
    return x.reshape(1, total)


def _tile_2d(rows, cols, itemsize):
    """Pick (row_tile, col_tile): ~2 MiB blocks, sublane/lane aligned, cdiv grid."""
    sub = _sublane(itemsize)
    lane_cols = _round_up(cols, _LANE)           # VMEM pads the lane dim to 128

    # Column tile: full width unless even a minimal-height stripe blows the cap
    # (pathologically wide slabs only).
    if cols <= _LANE or lane_cols * itemsize * sub <= _BLOCK_CAP_BYTES:
        col_tile = cols
    else:
        col_tile = max(_LANE,
                       ((_BLOCK_CAP_BYTES // (sub * itemsize)) // _LANE) * _LANE)
        col_tile = min(col_tile, cols)
    col_bytes = _round_up(col_tile, _LANE) * itemsize
    n_col = pl.cdiv(cols, col_tile)

    # Row tile: as tall as the per-block cap allows, sublane aligned.
    row_tile = max(sub, (_BLOCK_CAP_BYTES // col_bytes) // sub * sub)

    # v7x: keep >= 4 grid steps (>= 2 per TensorCore) once the slab is a few
    # MiB so both cores stream HBM with prefetch/writeback overlap.
    # Harmless no-op on single-TC v5e/v6e.
    slab_bytes = rows * lane_cols * itemsize
    if slab_bytes >= 2 * _BLOCK_CAP_BYTES and pl.cdiv(rows, row_tile) * n_col < 4:
        want_rows = pl.cdiv(4, n_col)
        row_tile = min(row_tile, max(sub, _round_up(pl.cdiv(rows, want_rows), sub)))

    # Best-effort even total step count (balances v7x's two TensorCores).
    n_row = pl.cdiv(rows, row_tile)
    if n_row * n_col > 2 and (n_row * n_col) % 2:
        cand = max(sub, _round_up(pl.cdiv(rows, n_row + 1), sub))
        if (pl.cdiv(rows, cand) * n_col) % 2 == 0:
            row_tile = cand

    if row_tile >= rows:
        row_tile = rows                          # full extent: exempt from 8-rule
    if col_tile >= cols:
        col_tile = cols                          # full extent: exempt from 128-rule
    return row_tile, col_tile


def ilayer_forward(x, w):
    """Pallas equivalent of iLayer.forward: x * w, with w a (1,)-shaped parameter."""
    w_s = jnp.asarray(w).reshape((1,))
    if w_s.dtype.itemsize < 4:                   # SMEM scalar path is 32-bit word based
        w_s = w_s.astype(jnp.float32)

    if x.size == 0:
        return x

    nbytes = x.size * x.dtype.itemsize

    if nbytes <= _SMALL_BYTES:
        # Fast path (HARN's actual activation sizes): whole tensor in VMEM as a
        # single full-extent block — no grid, no reshape, no padding.
        xs = x if x.ndim >= 2 else x.reshape(1, -1)
        out = pl.pallas_call(
            _ilayer_kernel,
            in_specs=[pl.BlockSpec(memory_space=pltpu.MemorySpace.SMEM),
                      pl.BlockSpec(memory_space=pltpu.MemorySpace.VMEM)],
            out_specs=pl.BlockSpec(memory_space=pltpu.MemorySpace.VMEM),
            out_shape=jax.ShapeDtypeStruct(xs.shape, x.dtype),
        )(w_s, xs)
        return out.reshape(x.shape)

    # Large path: 2-D slab (no element padding), ~2 MiB blocks, cdiv grid with
    # a masked ragged last block, both grid axes "parallel".
    x2d = _as_2d(x)
    rows, cols = x2d.shape
    row_tile, col_tile = _tile_2d(rows, cols, x.dtype.itemsize)
    grid = (pl.cdiv(rows, row_tile), pl.cdiv(cols, col_tile))

    out2d = pl.pallas_call(
        _ilayer_kernel,
        grid=grid,
        in_specs=[pl.BlockSpec(memory_space=pltpu.MemorySpace.SMEM),   # scalar w
                  pl.BlockSpec((row_tile, col_tile), lambda i, j: (i, j))],
        out_specs=pl.BlockSpec((row_tile, col_tile), lambda i, j: (i, j)),
        out_shape=jax.ShapeDtypeStruct((rows, cols), x.dtype),
        compiler_params=pltpu.CompilerParams(
            dimension_semantics=("parallel", "parallel")),
    )(w_s, x2d)
    return out2d.reshape(x.shape)


if __name__ == "__main__":
    key = jax.random.PRNGKey(0)
    k_x, k_w = jax.random.split(key)
    w = jax.random.normal(k_w, (1,), jnp.float32)   # nn.Parameter(torch.randn(1))

    # 1) Spec-sized HARN activation -> small fast path (single full-array block).
    x1 = jax.random.normal(k_x, (2, 4, 16, 16), jnp.float32)
    o1 = jax.block_until_ready(ilayer_forward(x1, w))
    np.testing.assert_allclose(np.asarray(o1), np.asarray(x1 * w), rtol=1e-6, atol=1e-6)

    # 2) Larger slab -> lane-dense tiled path with >= 4 parallel grid steps.
    x2 = jax.random.normal(k_x, (4, 8, 128, 256), jnp.float32)
    o2 = jax.block_until_ready(ilayer_forward(x2, w))
    np.testing.assert_allclose(np.asarray(o2), np.asarray(x2 * w), rtol=1e-6, atol=1e-6)

    # 3) Row count not divisible by the tile -> exercises the masked ragged last block.
    x3 = jax.random.normal(k_x, (5, 8, 104, 128), jnp.float32)
    o3 = jax.block_until_ready(ilayer_forward(x3, w))
    np.testing.assert_allclose(np.asarray(o3), np.asarray(x3 * w), rtol=1e-6, atol=1e-6)

    # 4) bf16 input -> exercises the dtype-aware (16,128) sublane tiling.
    x4 = jax.random.normal(k_x, (8, 8, 130, 128), jnp.float32).astype(jnp.bfloat16)
    o4 = jax.block_until_ready(ilayer_forward(x4, w))
    ref4 = (x4.astype(jnp.float32) * w).astype(jnp.bfloat16)
    np.testing.assert_allclose(np.asarray(o4.astype(jnp.float32)),
                               np.asarray(ref4.astype(jnp.float32)),
                               rtol=1e-2, atol=1e-2)

    # 5) Awkward small shape (nothing divisible by 128) -> still zero padding anywhere.
    x5 = jax.random.normal(k_x, (2, 3, 50, 70), jnp.float32)
    o5 = jax.block_until_ready(ilayer_forward(x5, w))
    np.testing.assert_allclose(np.asarray(o5), np.asarray(x5 * w), rtol=1e-6, atol=1e-6)

    print("KERNEL_OK")
</pallas_src>

<mosaic_0001>
module attributes {stable_mosaic.version = 11 : i64} {
  func.func @_ilayer_kernel(%arg0: memref<1xf32, #tpu.memory_space<smem>>, %arg1: memref<2x4x16x16xf32, #tpu.memory_space<vmem>>, %arg2: memref<2x4x16x16xf32, #tpu.memory_space<vmem>>) attributes {dimension_semantics = [], scalar_prefetch = 0 : i64, scratch_operands = 0 : i64, tpu.core_type = #tpu.core_type<tc>} {
    %c0 = arith.constant 0 : index
    %c0_0 = arith.constant 0 : index
    %c0_1 = arith.constant 0 : index
    %c0_2 = arith.constant 0 : index
    %0 = vector.load %arg1[%c0, %c0_0, %c0_1, %c0_2] : memref<2x4x16x16xf32, #tpu.memory_space<vmem>>, vector<2x4x16x16xf32>
    %c0_3 = arith.constant 0 : index
    %1 = memref.load %arg0[%c0_3] : memref<1xf32, #tpu.memory_space<smem>>
    %2 = vector.broadcast %1 : f32 to vector<2x4x16x16xf32>
    %3 = arith.mulf %0, %2 : vector<2x4x16x16xf32>
    %c0_4 = arith.constant 0 : index
    %c0_5 = arith.constant 0 : index
    %c0_6 = arith.constant 0 : index
    %c0_7 = arith.constant 0 : index
    %4 = vector.load %arg2[%c0_4, %c0_5, %c0_6, %c0_7] : memref<2x4x16x16xf32, #tpu.memory_space<vmem>>, vector<2x4x16x16xf32>
    tpu.vector_store %arg2[%c0_4, %c0_5, %c0_6, %c0_7], %3 {strides = array<i32>} : memref<2x4x16x16xf32, #tpu.memory_space<vmem>>, vector<2x4x16x16xf32>,
    return
  }
}

</mosaic_0001>

<bundles_post_ra>
// kernel: tpu_custom_call.1
= control target key start
LH: loop header
LB: loop body
LE: loop exit
PB: predicated region body
PF: predicated region fallthrough
CT: control target
= control target key end

     0   :  { %8 = vsyncpa [#allocation4], 0  ;;  %s205_s0 = inlined_call_operand.<no memory space> [shape: f32[1], index: 0, kind: input, shape index: {}]   ;;  %s206_s1 = inlined_call_operand.hbm [shape: f32[2,4,16,16], index: 1, kind: input, shape index: {}]   ;;  %s207_s2 = inlined_call_operand.hbm [shape: f32[2,4,16,16], index: 2, kind: output, shape index: {}]  }
   0x1   :  { %9 = vsyncpa [#allocation5], 0  ;;  %s16_s11 = sshll.u32 %s206_s1, 4  ;;  %s155_s12 = smov [#allocation3]   ;;  %s17_s11 = int_to_ptr.hbm [resolvable:$true] %s16_s11 }
   0x2   :  { %s18_s13 = sshll.u32 %s155_s12, 4  ;;  %s156_s14 = smov 128   ;;  %s19_s13 = int_to_ptr.vmem [resolvable:$true] %s18_s13 }
   0x3   :  { %s157_s15 = smov 8  }
   0x4   :  { %24 = dma.hbm_to_vmem [thread:$0]  %s17_s11, 2048, %s19_s13, [#allocation4], %s156_s14, %s156_s14, %s157_s15  }
   0x5   :  { %151 = dma.done.wait [#allocation4], 2048  }
   0x6   :  { %152 = vsyncadd [#allocation4], 4294965248  ;;  %v46_v0 = vstv %s205_s0  ;;  %v29_v1 = vld [vmem:[#allocation3] sm:$0xff]  ;;  %vm63_vm0 = vcmask 130048   ;;  %v30_v2 = vld [vmem:[#allocation3 + $0x8] sm:$0xff]  ;;  %s158_s0 = smov [#allocation6]  }
   0x7   :  { %v31_v3 = vld [vmem:[#allocation3 + $0x10] sm:$0xff]  ;;  %v47_v4 = vmul.f32 %v46_v0, %v29_v1  ;;  %v48_v5 = vmul.f32 %v46_v0, %v30_v2  ;;  %v32_v7 = vld [vmem:[#allocation3 + $0x18] sm:$0xff]  ;;  %v33_v8 = vld [vmem:[#allocation3 + $0x20] sm:$0xff]  ;;  %s84_s1 = sshll.u32 %s158_s0, 4  ;;  %s86_s20 = sshll.u32 %s207_s2, 4  ;;  %s85_s1 = int_to_ptr.vmem [resolvable:$true] %s84_s1  ;;  %s87_s20 = int_to_ptr.hbm [resolvable:$true] %s86_s20 }
   0x8   :  { %v49_v6 = vmul.f32 %v46_v0, %v31_v3  ;;  %v34_v9 = vld [vmem:[#allocation3 + $0x28] sm:$0xff]  ;;  %v50_v10 = vmul.f32 %v46_v0, %v32_v7  ;;  %v35_v11 = vld [vmem:[#allocation3 + $0x30] sm:$0xff]  ;;  %v51_v12 = vmul.f32 %v46_v0, %v33_v8  ;;  %v36_v13 = vld [vmem:[#allocation3 + $0x38] sm:$0xff] }
   0x9   :  { %64 = vst.msk [vmem:[#allocation6] sm:$0xff] %vm63_vm0, %v47_v4  ;;  %v52_v14 = vmul.f32 %v46_v0, %v34_v9  ;;  %v37_v15 = vld [vmem:[#allocation3 + $0x40] sm:$0xff]  ;;  %v53_v16 = vmul.f32 %v46_v0, %v35_v11  ;;  %v38_v17 = vld [vmem:[#allocation3 + $0x48] sm:$0xff]  ;;  %v54_v18 = vmul.f32 %v46_v0, %v36_v13  ;;  %v39_v19 = vld [vmem:[#allocation3 + $0x50] sm:$0xff] }
   0xa   :  { %65 = vst.msk [vmem:[#allocation6 + $0x8] sm:$0xff] %vm63_vm0, %v48_v5  ;;  %v55_v20 = vmul.f32 %v46_v0, %v37_v15  ;;  %v40_v21 = vld [vmem:[#allocation3 + $0x58] sm:$0xff]  ;;  %v56_v22 = vmul.f32 %v46_v0, %v38_v17  ;;  %v41_v23 = vld [vmem:[#allocation3 + $0x60] sm:$0xff]  ;;  %v57_v24 = vmul.f32 %v46_v0, %v39_v19  ;;  %v42_v25 = vld [vmem:[#allocation3 + $0x68] sm:$0xff] }
   0xb   :  { %66 = vst.msk [vmem:[#allocation6 + $0x10] sm:$0xff] %vm63_vm0, %v49_v6  ;;  %v58_v26 = vmul.f32 %v46_v0, %v40_v21  ;;  %v43_v27 = vld [vmem:[#allocation3 + $0x70] sm:$0xff]  ;;  %v59_v28 = vmul.f32 %v46_v0, %v41_v23  ;;  %v44_v29 = vld [vmem:[#allocation3 + $0x78] sm:$0xff]  ;;  %v60_v30 = vmul.f32 %v46_v0, %v42_v25 }
   0xc   :  { %67 = vst.msk [vmem:[#allocation6 + $0x18] sm:$0xff] %vm63_vm0, %v50_v10  ;;  %v61_v31 = vmul.f32 %v46_v0, %v43_v27  ;;  %v62_v32 = vmul.f32 %v46_v0, %v44_v29 }
   0xd   :  { %68 = vst.msk [vmem:[#allocation6 + $0x20] sm:$0xff] %vm63_vm0, %v51_v12 }
   0xe   :  { %69 = vst.msk [vmem:[#allocation6 + $0x28] sm:$0xff] %vm63_vm0, %v52_v14 }
   0xf   :  { %70 = vst.msk [vmem:[#allocation6 + $0x30] sm:$0xff] %vm63_vm0, %v53_v16 }
  0x10   :  { %71 = vst.msk [vmem:[#allocation6 + $0x38] sm:$0xff] %vm63_vm0, %v54_v18 }
  0x11   :  { %72 = vst.msk [vmem:[#allocation6 + $0x40] sm:$0xff] %vm63_vm0, %v55_v20 }
  0x12   :  { %73 = vst.msk [vmem:[#allocation6 + $0x48] sm:$0xff] %vm63_vm0, %v56_v22 }
  0x13   :  { %74 = vst.msk [vmem:[#allocation6 + $0x50] sm:$0xff] %vm63_vm0, %v57_v24 }
  0x14   :  { %75 = vst.msk [vmem:[#allocation6 + $0x58] sm:$0xff] %vm63_vm0, %v58_v26 }
  0x15   :  { %76 = vst.msk [vmem:[#allocation6 + $0x60] sm:$0xff] %vm63_vm0, %v59_v28 }
  0x16   :  { %77 = vst.msk [vmem:[#allocation6 + $0x68] sm:$0xff] %vm63_vm0, %v60_v30 }
  0x17   :  { %78 = vst.msk [vmem:[#allocation6 + $0x70] sm:$0xff] %vm63_vm0, %v61_v31 }
  0x18   :  { %79 = vst.msk [vmem:[#allocation6 + $0x78] sm:$0xff] %vm63_vm0, %v62_v32 }
  0x19   :  { %92 = dma.vmem_to_hbm [thread:$0]  %s85_s1, 2048, %s87_s20, [#allocation5], %s156_s14, %s156_s14, %s157_s15  }
  0x1a   :  { %153 = dma.done.wait [#allocation5], 2048  }
  0x1b   :  { %154 = vsyncadd [#allocation5], 4294965248 }
  0x1c   :  { %97 = vsyncpa [#allocation4], 1 }
  0x1d   :  { %98 = vsyncpa [#allocation5], 1 }

</bundles_post_ra>
